<compile_context>
chip_gen: v6e
topology: v6e:2x2x1
jax: 0.10.0
libtpu: 0.0.40
codegen_flags: <defaults>
</compile_context>

<pallas_src>
import functools

import jax
import jax.numpy as jnp
from jax.experimental import pallas as pl
from jax.experimental.pallas import tpu as pltpu


# ---------------------------------------------------------------------------
# pltpu.roll direction probe (tiny kernel, cached Python bool).
# The im2col taps need "out[i] = x[i + d]"; the required rotation sign depends
# on roll's convention, so pin it empirically once instead of hard-coding it.
# ---------------------------------------------------------------------------
_ROLL_LIKE_JNP = None


def _roll_like_jnp():
    global _ROLL_LIKE_JNP
    if _ROLL_LIKE_JNP is None:
        def k(x_ref, o_ref):
            o_ref[...] = pltpu.roll(x_ref[...], 1, axis=1)

        with jax.ensure_compile_time_eval():
            x = jnp.arange(8 * 128, dtype=jnp.float32).reshape(8, 128)
            y = pl.pallas_call(
                k, out_shape=jax.ShapeDtypeStruct((8, 128), jnp.float32))(x)
            _ROLL_LIKE_JNP = bool(jnp.array_equal(y, jnp.roll(x, 1, axis=1)))
    return _ROLL_LIKE_JNP


# ---------------------------------------------------------------------------
# Fused per-level kernel: [skip CAB + upsample-add] -> n_cab CABs -> [1x1 proj]
# ---------------------------------------------------------------------------
def _level_kernel(*refs, H, W, n_skip, n_cab, has_proj, roll_like_jnp):
    HW = H * W

    # ---- unpack refs (order matches level_chain's args) -------------------
    idx = 0
    x_ref = refs[idx]; idx += 1
    xu_ref = None
    if n_skip:
        xu_ref = refs[idx]; idx += 1
    skip_w = refs[idx:idx + 4 * n_skip]; idx += 4 * n_skip
    dec_w = refs[idx:idx + 4 * n_cab]; idx += 4 * n_cab
    proj_w_ref = refs[idx] if has_proj else None
    idx += 1 if has_proj else 0
    o_ref = refs[idx]; idx += 1
    proj_o_ref = refs[idx] if has_proj else None

    # ---- border masks for the 9 conv taps (shared by every conv) ----------
    pos = jax.lax.broadcasted_iota(jnp.int32, (1, HW), 1)
    row = pos // W
    col = pos - row * W
    masks = {}
    for dy in (-1, 0, 1):
        for dx in (-1, 0, 1):
            if dy == 0 and dx == 0:
                masks[(dy, dx)] = None
                continue
            ok = ((row + dy >= 0) & (row + dy < H)
                  & (col + dx >= 0) & (col + dx < W))
            masks[(dy, dx)] = ok.astype(jnp.bfloat16)       # multiplicative

    sign = -1 if roll_like_jnp else 1

    def conv3x3(v, w_ref):
        # v: (Cin, HW) bf16; w_ref: (9, Cout, Cin) bf16.
        # Taps via XLU lane rotations + border mask; 9 accumulating MXU dots
        # (Cout, Cin) x (Cin, HW) -> (Cout, HW) f32 (no padded scratch, no
        # (9C, HW) patch held live in VMEM).
        acc = None
        k = 0
        for dy in (-1, 0, 1):
            for dx in (-1, 0, 1):
                d = dy * W + dx
                t = v if d == 0 else pltpu.roll(v, (sign * d) % HW, axis=1)
                m = masks[(dy, dx)]
                if m is not None:
                    t = t * m
                p = jnp.dot(w_ref[k], t, preferred_element_type=jnp.float32)
                acc = p if acc is None else acc + p
                k += 1
        return acc                                           # (Cout, HW) f32

    def cab(cur, w1_ref, w2_ref, cw1_ref, cw2_ref):
        # CAB: conv3x3 -> ReLU -> conv3x3 -> CALayer scale -> + residual.
        r = conv3x3(cur.astype(jnp.bfloat16), w1_ref)
        r = conv3x3(jnp.maximum(r, 0.0).astype(jnp.bfloat16), w2_ref)
        # CALayer on VPU/XLU/EUP (no M=1 MXU dots): global-average pool over
        # lanes, two tiny f32 contractions, sigmoid, per-channel scale.
        pooled = jnp.mean(r, axis=1, keepdims=True)                     # (C, 1)
        h = jnp.maximum(
            jnp.sum(cw1_ref[...] * pooled, axis=0, keepdims=True), 0.0)  # (1, Cr)
        s = jax.nn.sigmoid(
            jnp.sum(cw2_ref[...] * h, axis=1, keepdims=True))            # (C, 1)
        return r * s + cur

    cur = x_ref[0].astype(jnp.float32)                       # (C, HW)
    if n_skip:
        # skip_attn CAB on encoder features + SkipUpSample add, fused.
        cur = cab(cur, *skip_w) + xu_ref[0].astype(jnp.float32)
    for i in range(n_cab):
        cur = cab(cur, *dec_w[4 * i:4 * i + 4])

    o_ref[0] = cur.astype(o_ref.dtype)

    if has_proj:
        # SkipUpSample's 1x1 conv at LOW resolution (commutes with the
        # bilinear x2 upsample: both linear, bias-free).  Lane-dense output.
        z = jnp.dot(proj_w_ref[...], cur.astype(jnp.bfloat16),
                    preferred_element_type=jnp.float32)      # (Cp, HW)
        proj_o_ref[0] = z.astype(proj_o_ref.dtype)


# ---------------------------------------------------------------------------
# Wrapper: layout plumbing + pallas_call per decoder level
# ---------------------------------------------------------------------------
def _cab_kernel_weights(p):
    def conv_w(w_oihw):                      # (Cout, Cin, 3, 3) -> (9, Cout, Cin)
        co, ci = w_oihw.shape[0], w_oihw.shape[1]
        return (jnp.transpose(w_oihw, (2, 3, 0, 1))
                .reshape(9, co, ci).astype(jnp.bfloat16))
    return [conv_w(p['conv1']), conv_w(p['conv2']),
            jnp.transpose(p['ca_w1']).astype(jnp.float32),   # (C, Cr)
            p['ca_w2'].astype(jnp.float32)]                  # (C, Cr)


def level_chain(x, dec_cabs, skip_cab=None, xu=None, proj_w=None):
    """One fused Pallas launch for a decoder level.

    x : (B, C, H, W).  If skip_cab is given the kernel computes
    CAB_skip(x) + xu (the SkipUpSample add) before the decoder CABs.
    Returns `dec` or `(dec, proj_w @ dec)` (1x1 conv at this resolution).
    """
    B, C, H, W = x.shape
    HW = H * W
    n_cab = len(dec_cabs)
    n_skip = 0 if skip_cab is None else 1
    has_proj = proj_w is not None

    act_spec = pl.BlockSpec((1, C, HW), lambda b: (b, 0, 0))

    def wspec(a):
        nd = a.ndim
        return pl.BlockSpec(a.shape, lambda b: (0,) * nd)

    args, in_specs = [], []

    def add(a, spec):
        args.append(a)
        in_specs.append(spec)

    # Channels on sublanes, flattened spatial on lanes (free NCHW reshape).
    add(x.reshape(B, C, HW), act_spec)
    if n_skip:
        add(xu.reshape(B, C, HW), act_spec)
        for a in _cab_kernel_weights(skip_cab):
            add(a, wspec(a))
    for p in dec_cabs:
        for a in _cab_kernel_weights(p):
            add(a, wspec(a))
    if has_proj:
        pw = proj_w.astype(jnp.bfloat16)                     # (Cp, C)
        add(pw, wspec(pw))

    out_shapes = [jax.ShapeDtypeStruct((B, C, HW), x.dtype)]
    out_specs = [act_spec]
    if has_proj:
        Cp = proj_w.shape[0]
        out_shapes.append(jax.ShapeDtypeStruct((B, Cp, HW), x.dtype))
        out_specs.append(pl.BlockSpec((1, Cp, HW), lambda b: (b, 0, 0)))

    kernel = functools.partial(
        _level_kernel, H=H, W=W, n_skip=n_skip, n_cab=n_cab,
        has_proj=has_proj, roll_like_jnp=_roll_like_jnp())

    outs = pl.pallas_call(
        kernel,
        out_shape=tuple(out_shapes),
        grid=(B,),
        in_specs=in_specs,
        out_specs=tuple(out_specs),
        compiler_params=pltpu.CompilerParams(
            dimension_semantics=("parallel",),
            vmem_limit_bytes=48 * 1024 * 1024),   # leave headroom on v7x (64 MiB/TC)
    )(*args)

    dec = outs[0].reshape(B, C, H, W)
    if has_proj:
        return dec, outs[1].reshape(B, proj_w.shape[0], H, W)
    return dec


# ---------------------------------------------------------------------------
# Bilinear x2 (align_corners=False): cheap XLA elementwise glue.  The heavy
# part of SkipUpSample (its 1x1 conv) already ran at low res inside the kernel.
# ---------------------------------------------------------------------------
def _up2_along(v, axis):
    n = v.shape[axis]
    sl = lambda a, b: jax.lax.slice_in_dim(v, a, b, axis=axis)
    prev = jnp.concatenate([sl(0, 1), sl(0, n - 1)], axis=axis)   # clamped i-1
    nxt = jnp.concatenate([sl(1, n), sl(n - 1, n)], axis=axis)    # clamped i+1
    even = 0.25 * prev + 0.75 * v
    odd = 0.75 * v + 0.25 * nxt
    out = jnp.stack([even, odd], axis=axis + 1)
    new_shape = list(v.shape)
    new_shape[axis] = 2 * n
    return out.reshape(new_shape)


def bilinear_up2_nchw(x):
    return _up2_along(_up2_along(x, 2), 3)


# ---------------------------------------------------------------------------
# Decoder forward (mirrors PyTorch Decoder.forward) -- 3 pallas_calls total.
# ---------------------------------------------------------------------------
def decoder_forward(params, enc1, enc2, enc3):
    # decoder_level3 (2 CABs) + up32's 1x1 conv at low resolution.
    dec3, z3 = level_chain(enc3, params['dec3'], proj_w=params['up32_w'])
    # skip_attn2 + (up2(z3) + y2) + decoder_level2 + up21's 1x1 conv, fused.
    dec2, z2 = level_chain(enc2, params['dec2'], skip_cab=params['skip2'],
                           xu=bilinear_up2_nchw(z3), proj_w=params['up21_w'])
    # skip_attn1 + (up2(z2) + y1) + decoder_level1, fused.
    dec1 = level_chain(enc1, params['dec1'], skip_cab=params['skip1'],
                       xu=bilinear_up2_nchw(z2))
    return [dec1, dec2, dec3]


# ---------------------------------------------------------------------------
# Deterministic params (shapes from Decoder.__init__; bias=False, act=ReLU)
# ---------------------------------------------------------------------------
def init_cab_params(key, C, reduction):
    k1, k2, k3, k4 = jax.random.split(key, 4)
    Cr = max(C // reduction, 1)
    return dict(
        conv1=0.05 * jax.random.normal(k1, (C, C, 3, 3), jnp.float32),  # OIHW
        conv2=0.05 * jax.random.normal(k2, (C, C, 3, 3), jnp.float32),
        ca_w1=0.10 * jax.random.normal(k3, (Cr, C), jnp.float32),       # out,in
        ca_w2=0.10 * jax.random.normal(k4, (C, Cr), jnp.float32),       # out,in
    )


def init_decoder_params(key, n_feat, scale_unetfeats, reduction):
    C1 = n_feat
    C2 = n_feat + scale_unetfeats
    C3 = n_feat + 2 * scale_unetfeats
    ks = jax.random.split(key, 10)
    return dict(
        dec1=[init_cab_params(ks[0], C1, reduction),
              init_cab_params(ks[1], C1, reduction)],
        dec2=[init_cab_params(ks[2], C2, reduction),
              init_cab_params(ks[3], C2, reduction)],
        dec3=[init_cab_params(ks[4], C3, reduction),
              init_cab_params(ks[5], C3, reduction)],
        skip1=init_cab_params(ks[6], C1, reduction),
        skip2=init_cab_params(ks[7], C2, reduction),
        up21_w=0.10 * jax.random.normal(ks[8], (C1, C2), jnp.float32),  # out,in
        up32_w=0.10 * jax.random.normal(ks[9], (C2, C3), jnp.float32),
    )


# ---------------------------------------------------------------------------
# Pure-JAX f32 reference (PyTorch order of ops) for a loose numerical check.
# ---------------------------------------------------------------------------
def _ref_conv3x3(x, w):
    return jax.lax.conv_general_dilated(
        x, w, window_strides=(1, 1), padding=((1, 1), (1, 1)),
        dimension_numbers=('NCHW', 'OIHW', 'NCHW'),
        precision=jax.lax.Precision.HIGHEST)


def _ref_cab(x, p):
    r = jnp.maximum(_ref_conv3x3(x, p['conv1']), 0.0)
    r = _ref_conv3x3(r, p['conv2'])
    pooled = jnp.mean(r, axis=(2, 3), keepdims=True)
    h = jnp.maximum(jnp.einsum('bcij,kc->bkij', pooled, p['ca_w1'],
                               precision=jax.lax.Precision.HIGHEST), 0.0)
    s = jax.nn.sigmoid(jnp.einsum('bkij,ck->bcij', h, p['ca_w2'],
                                  precision=jax.lax.Precision.HIGHEST))
    return r * s + x


def _ref_skip_up(x_low, y, w):      # SkipUpSample: upsample -> 1x1 conv -> + y
    xu = bilinear_up2_nchw(x_low)
    xu = jnp.einsum('oc,bchw->bohw', w, xu,
                    precision=jax.lax.Precision.HIGHEST)
    return xu + y


def ref_decoder(params, enc1, enc2, enc3):
    dec3 = _ref_cab(_ref_cab(enc3, params['dec3'][0]), params['dec3'][1])
    x = _ref_skip_up(dec3, _ref_cab(enc2, params['skip2']), params['up32_w'])
    dec2 = _ref_cab(_ref_cab(x, params['dec2'][0]), params['dec2'][1])
    x = _ref_skip_up(dec2, _ref_cab(enc1, params['skip1']), params['up21_w'])
    dec1 = _ref_cab(_ref_cab(x, params['dec1'][0]), params['dec1'][1])
    return dec1, dec2, dec3


if __name__ == "__main__":
    n_feat, scale_unetfeats, reduction = 16, 8, 4
    B, H, W = 2, 32, 32
    C1, C2, C3 = n_feat, n_feat + scale_unetfeats, n_feat + 2 * scale_unetfeats

    key = jax.random.PRNGKey(0)
    kp, k1, k2, k3 = jax.random.split(key, 4)
    params = init_decoder_params(kp, n_feat, scale_unetfeats, reduction)

    # Encoder outputs at full / half / quarter resolution (NCHW).
    enc1 = jax.random.normal(k1, (B, C1, H, W), jnp.float32)
    enc2 = jax.random.normal(k2, (B, C2, H // 2, W // 2), jnp.float32)
    enc3 = jax.random.normal(k3, (B, C3, H // 4, W // 4), jnp.float32)

    _roll_like_jnp()   # prime the roll-direction probe outside of jit tracing

    dec1, dec2, dec3 = jax.jit(decoder_forward)(params, enc1, enc2, enc3)
    jax.block_until_ready((dec1, dec2, dec3))

    assert dec1.shape == (B, C1, H, W)
    assert dec2.shape == (B, C2, H // 2, W // 2)
    assert dec3.shape == (B, C3, H // 4, W // 4)

    # Loose tolerance: kernel runs the conv path through bf16 MXU dots.
    r1, r2, r3 = ref_decoder(params, enc1, enc2, enc3)
    for got, want in ((dec1, r1), (dec2, r2), (dec3, r3)):
        err = float(jnp.max(jnp.abs(got - want)))
        assert err < 1e-1, f"max abs error {err}"

    print("KERNEL_OK")
</pallas_src>

<mosaic_0001>
module attributes {stable_mosaic.version = 11 : i64} {
  func.func @k(%arg0: memref<8x128xf32, #tpu.memory_space<vmem>>, %arg1: memref<8x128xf32, #tpu.memory_space<vmem>>) attributes {dimension_semantics = [], scalar_prefetch = 0 : i64, scratch_operands = 0 : i64, tpu.core_type = #tpu.core_type<tc>} {
    %c0 = arith.constant 0 : index
    %c0_0 = arith.constant 0 : index
    %0 = vector.load %arg0[%c0, %c0_0] : memref<8x128xf32, #tpu.memory_space<vmem>>, vector<8x128xf32>
    %c1_i32 = arith.constant 1 : i32
    %1 = tpu.dynamic_rotate %0 by %c1_i32 dim 1 : vector<8x128xf32>, i32 -> vector<8x128xf32>
    %c0_1 = arith.constant 0 : index
    %c0_2 = arith.constant 0 : index
    %2 = vector.load %arg1[%c0_1, %c0_2] : memref<8x128xf32, #tpu.memory_space<vmem>>, vector<8x128xf32>
    tpu.vector_store %arg1[%c0_1, %c0_2], %1 {strides = array<i32>} : memref<8x128xf32, #tpu.memory_space<vmem>>, vector<8x128xf32>,
    return
  }
}

</mosaic_0001>

<bundles_post_ra>
// kernel: tpu_custom_call.1
= control target key start
LH: loop header
LB: loop body
LE: loop exit
PB: predicated region body
PF: predicated region fallthrough
CT: control target
= control target key end

     0   :  { %6 = vsyncpa [#allocation3], 0  ;;  %s106_s0 = inlined_call_operand.hbm [shape: f32[8,128], index: 0, kind: input, shape index: {}]   ;;  %s107_s1 = inlined_call_operand.hbm [shape: f32[8,128], index: 1, kind: output, shape index: {}]  }
   0x1   :  { %7 = vsyncpa [#allocation4], 0  ;;  %s87_s6 = smov [#allocation2]  }
   0x2   :  { %s14_s7 = sshll.u32 %s87_s6, 4  ;;  %s15_s7 = int_to_ptr.vmem [resolvable:$true] %s14_s7 }
   0x3   :  { %s51_s8 = scalar_lea.vmem %s15_s7, 128  ;;  %p56_p1 = scmp.lt.s32.totalorder %s15_s7, %s15_s7 }
   0x4   :  { %p52_p0 = scmp.ne.s32.totalorder %s15_s7, %s51_s8  ;;  %p57_p2 = scmp.lt.s32.totalorder %s51_s8, %s51_s8 }
   0x6   :  { %p58_p3 = por %p57_p2, %p56_p1 }
   0x8   :  { %p59_p4 = pnand %p58_p3, %p52_p0 }
   0xa   :  { %62 = shalt.err (!%p59_p4)
}
   0xb   :  { %17 = dma.hbm_to_vmem [thread:$0]  %s106_s0, 128, %s15_s7, [#allocation3]  }
   0xc   :  { %83 = dma.done.wait [#allocation3], 128  }
   0xd   :  { %84 = vsyncadd [#allocation3], 4294967168  ;;  %v21_v0 = vld [vmem:[#allocation2] sm:$0xff]  ;;  %s88_s11 = smov 1   ;;  %s89_s12 = smov [#allocation5]  }
   0xe   :  { %22 = vrot.lane.b32.xlu0 %v21_v0, %s88_s11  ;;  %s31_s13 = sshll.u32 %s89_s12, 4  ;;  %s32_s13 = int_to_ptr.vmem [resolvable:$true] %s31_s13 }
   0xf   :  { %s63_s14 = scalar_lea.vmem %s32_s13, 128  ;;  %p68_p6 = scmp.lt.s32.totalorder %s32_s13, %s32_s13 }
  0x10   :  { %p64_p5 = scmp.ne.s32.totalorder %s32_s13, %s63_s14  ;;  %p69_p7 = scmp.lt.s32.totalorder %s63_s14, %s63_s14 }
  0x12   :  { %p70_p8 = por %p69_p7, %p68_p6 }
  0x14   :  { %p71_p9 = pnand %p70_p8, %p64_p5 }
  0x80   :  { %v23_v1 = vpop.permute.xlu0 %22 }
  0x81   :  { %24 = vst [vmem:[#allocation5] sm:$0xff] %v23_v1 }
  0x82   :  { %74 = shalt.err (!%p71_p9)
}
  0x83   :  { %34 = dma.vmem_to_hbm [thread:$0]  %s32_s13, 128, %s107_s1, [#allocation4]  }
  0x84   :  { %85 = dma.done.wait [#allocation4], 128  }
  0x85   :  { %86 = vsyncadd [#allocation4], 4294967168 }
  0x86   :  { %38 = vsyncpa [#allocation3], 1 }
  0x87   :  { %39 = vsyncpa [#allocation4], 1 }

</bundles_post_ra>
